<compile_context>
chip_gen: v6e
topology: v6e:2x2x1
jax: 0.10.0
libtpu: 0.0.40
codegen_flags: <defaults>
</compile_context>

<pallas_src>
import functools
import math

import numpy as np
import jax
import jax.numpy as jnp
from jax.experimental import pallas as pl
from jax.experimental.pallas import tpu as pltpu


def _round_up(n, m):
    return ((n + m - 1) // m) * m


def _self_attention_kernel(x_ref, wq_ref, bq_ref, wk_ref, bk_ref, wv_ref, bv_ref, out_ref,
                           *, hidden_dim, compute_dtype):
    """One grid step = full self-attention for a block of batch rows.

    x_ref:   (block_b, T, Dp)  compute_dtype
    wq/wk:   (Dp, Hp)          compute_dtype
    bq/bk:   (1, Hp)           f32
    wv:      (Dp, Op)          compute_dtype
    bv:      (1, Op)           f32
    out_ref: (block_b, T, Op)  f32
    """
    bb, T, Dp = x_ref.shape
    Hp = wq_ref.shape[1]
    Op = wv_ref.shape[1]

    # Stack the batch block so the projection matmuls see M = bb*T rows (MXU-filling).
    x2 = x_ref[...].reshape(bb * T, Dp)

    q = jnp.dot(x2, wq_ref[...], preferred_element_type=jnp.float32) + bq_ref[...]   # (bb*T, Hp)
    k = jnp.dot(x2, wk_ref[...], preferred_element_type=jnp.float32) + bk_ref[...]   # (bb*T, Hp)
    v = jnp.dot(x2, wv_ref[...], preferred_element_type=jnp.float32) + bv_ref[...]   # (bb*T, Op)

    q3 = q.reshape(bb, T, Hp)
    k3 = k.reshape(bb, T, Hp)
    v3 = v.reshape(bb, T, Op)

    # Batched scores contracting the last (H) dims directly: no k.T relayout.
    s = jax.lax.dot_general(
        q3, k3,
        dimension_numbers=(((2,), (2,)), ((0,), (0,))),
        preferred_element_type=jnp.float32,
    )                                                                                 # (bb, T, T)

    # Numerically-stable softmax over keys, f32 math.
    s_max = jnp.max(s, axis=-1, keepdims=True)
    p = jnp.exp(s - s_max)
    denom = jnp.sum(p, axis=-1, keepdims=True)
    # Fused epilogue: EUP reciprocal + post-softmax 1/sqrt(hidden_dim) scale (PyTorch quirk:
    # the scale is applied AFTER the softmax) folded into the (T, 1) vector.
    inv = pl.reciprocal(denom, approx=True) * (1.0 / math.sqrt(hidden_dim))
    attn = p * inv                                                                    # (bb, T, T)

    ctx = jax.lax.dot_general(
        attn.astype(compute_dtype), v3.astype(compute_dtype),
        dimension_numbers=(((2,), (1,)), ((0,), (0,))),
        preferred_element_type=jnp.float32,
    )                                                                                 # (bb, T, Op)

    out_ref[...] = ctx.astype(out_ref.dtype)


def self_attention_padded(x, params, *, compute_dtype=jnp.bfloat16, block_b=None):
    """Run the Pallas kernel. Returns the (B, T, O) attention output (padding removed)."""
    B, T, D = x.shape
    H = params["wq"].shape[1]
    O = params["wv"].shape[1]

    LANE = 128
    Dp, Hp, Op = _round_up(D, LANE), _round_up(H, LANE), _round_up(O, LANE)

    # Lane-pad weights/biases with zeros; padded columns contribute 0 everywhere, so results
    # in the first H/O columns are unchanged. (In production, pad/cast the weights once.)
    wq = jnp.pad(params["wq"], ((0, Dp - D), (0, Hp - H))).astype(compute_dtype)
    wk = jnp.pad(params["wk"], ((0, Dp - D), (0, Hp - H))).astype(compute_dtype)
    wv = jnp.pad(params["wv"], ((0, Dp - D), (0, Op - O))).astype(compute_dtype)
    bq = jnp.pad(params["bq"], ((0, 0), (0, Hp - H)))            # biases stay f32 (added to f32 acc)
    bk = jnp.pad(params["bk"], ((0, 0), (0, Hp - H)))
    bv = jnp.pad(params["bv"], ((0, 0), (0, Op - O)))

    # Batch blocking: pick block_b so block_b*T >= 128 rows per grid step (fills the MXU M dim
    # on v5e/v6e/v7x). For large B this still leaves >=2 "parallel" blocks so both v7x
    # TensorCores stay busy; for the tiny demo it collapses to a single grid step.
    if block_b is None:
        block_b = min(B, max(1, _round_up(128, T) // T))
    num_blocks = (B + block_b - 1) // block_b
    Bp = num_blocks * block_b

    xp = jnp.pad(x, ((0, Bp - B), (0, 0), (0, Dp - D))).astype(compute_dtype)

    kernel = functools.partial(
        _self_attention_kernel, hidden_dim=H, compute_dtype=compute_dtype)

    grid_spec = pltpu.PrefetchScalarGridSpec(
        num_scalar_prefetch=0,
        grid=(num_blocks,),
        in_specs=[
            pl.BlockSpec((block_b, T, Dp), lambda b: (b, 0, 0)),   # x: one batch block per step
            pl.BlockSpec((Dp, Hp), lambda b: (0, 0)),              # Wq (constant index -> no re-DMA)
            pl.BlockSpec((1, Hp), lambda b: (0, 0)),               # bq
            pl.BlockSpec((Dp, Hp), lambda b: (0, 0)),              # Wk
            pl.BlockSpec((1, Hp), lambda b: (0, 0)),               # bk
            pl.BlockSpec((Dp, Op), lambda b: (0, 0)),              # Wv
            pl.BlockSpec((1, Op), lambda b: (0, 0)),               # bv
        ],
        out_specs=pl.BlockSpec((block_b, T, Op), lambda b: (b, 0, 0)),   # lane-dense (Op % 128 == 0)
    )

    padded_out = pl.pallas_call(
        kernel,
        out_shape=jax.ShapeDtypeStruct((Bp, T, Op), jnp.float32),
        grid_spec=grid_spec,
        compiler_params=pltpu.CompilerParams(
            dimension_semantics=("parallel",),   # batch-block axis shards across TCs on v7x
        ),
    )(xp, wq, bq, wk, bk, wv, bv)

    return padded_out[:B, :, :O]


def self_attention_forward(input_x, seq_lens, params, *, compute_dtype=jnp.bfloat16):
    """Full SelfAttention.forward equivalent.

    input_x:  (B, T, input_dim) float32
    seq_lens: python list / np array of host ints
    returns:  (sum(seq_lens), output_dim)
    """
    # TODO(synk): dropout layers treated as identity (eval mode).
    padded = self_attention_padded(input_x, params, compute_dtype=compute_dtype)   # (B, T, O)
    O = padded.shape[2]
    # seq_lens are host ints -> static, contiguous per-batch slices (DMA-friendly), then concat.
    pieces = [jax.lax.slice(padded, (i, 0, 0), (i + 1, int(l), O))[0]
              for i, l in enumerate(seq_lens)]
    return jnp.concatenate(pieces, axis=0)


def init_self_attention_params(key, input_dim, hidden_dim, output_dim):
    """Deterministic init matching PyTorch nn.Linear default (U(-1/sqrt(in), 1/sqrt(in)))."""
    ks = jax.random.split(key, 6)
    bound = 1.0 / math.sqrt(input_dim)

    def u(k, shape):
        return jax.random.uniform(k, shape, jnp.float32, -bound, bound)

    # PyTorch Linear stores weight as (out, in); keep it transposed (in, out) for the kernel.
    wq = u(ks[0], (hidden_dim, input_dim)).T      # (D, H)
    bq = u(ks[1], (hidden_dim,)).reshape(1, hidden_dim)
    wk = u(ks[2], (hidden_dim, input_dim)).T      # (D, H)
    bk = u(ks[3], (hidden_dim,)).reshape(1, hidden_dim)
    wv = u(ks[4], (output_dim, input_dim)).T      # (D, O)
    bv = u(ks[5], (output_dim,)).reshape(1, output_dim)
    return {"wq": wq, "bq": bq, "wk": wk, "bk": bk, "wv": wv, "bv": bv}


if __name__ == "__main__":
    # Small shapes consistent with the module: batch=2, seq=8, input_dim=32,
    # hidden_dim=32, output_dim=32.
    B, T, D, H, O = 2, 8, 32, 32, 32
    key = jax.random.PRNGKey(0)
    k_x, k_p = jax.random.split(key)

    input_x = jax.random.normal(k_x, (B, T, D), jnp.float32)
    seq_lens = [8, 5]
    params = init_self_attention_params(k_p, D, H, O)

    # Default (bf16 MXU operands) and f32-operand variants.
    flat_bf16 = self_attention_forward(input_x, seq_lens, params)                    # bf16 MXU path
    flat_f32 = self_attention_forward(input_x, seq_lens, params,
                                      compute_dtype=jnp.float32)                     # f32 MXU path
    flat_bf16, flat_f32 = jax.block_until_ready((flat_bf16, flat_f32))

    # Pure-JAX reference (mirrors the PyTorch module in eval mode).
    def ref(x):
        q = x @ params["wq"] + params["bq"]
        k = x @ params["wk"] + params["bk"]
        v = x @ params["wv"] + params["bv"]
        s = jax.nn.softmax(jnp.einsum("btd,bsd->bts", q, k), axis=-1) / math.sqrt(H)
        return jnp.einsum("bts,bso->bto", s, v)

    r = ref(input_x)
    r_flat = jnp.concatenate([r[i, :seq_lens[i]] for i in range(B)], axis=0)

    assert flat_f32.shape == (sum(seq_lens), O), flat_f32.shape
    assert flat_bf16.shape == (sum(seq_lens), O), flat_bf16.shape
    assert bool(jnp.all(jnp.isfinite(flat_f32)))
    assert bool(jnp.all(jnp.isfinite(flat_bf16)))
    # f32 operands: only the approx EUP reciprocal deviates from the exact reference.
    np.testing.assert_allclose(np.asarray(flat_f32), np.asarray(r_flat), atol=2e-3, rtol=2e-3)
    # bf16 MXU operands: looser tolerance (intentional numerics trade-off per review).
    np.testing.assert_allclose(np.asarray(flat_bf16), np.asarray(r_flat), atol=3e-2, rtol=3e-2)
    print("KERNEL_OK")
</pallas_src>

<mosaic_0001>
module attributes {stable_mosaic.version = 11 : i64} {
  func.func @_self_attention_kernel(%arg0: i32, %arg1: memref<2x8x128xbf16, #tpu.memory_space<vmem>>, %arg2: memref<128x128xbf16, #tpu.memory_space<vmem>>, %arg3: memref<1x128xf32, #tpu.memory_space<vmem>>, %arg4: memref<128x128xbf16, #tpu.memory_space<vmem>>, %arg5: memref<1x128xf32, #tpu.memory_space<vmem>>, %arg6: memref<128x128xbf16, #tpu.memory_space<vmem>>, %arg7: memref<1x128xf32, #tpu.memory_space<vmem>>, %arg8: memref<2x8x128xf32, #tpu.memory_space<vmem>>) attributes {dimension_semantics = [#tpu.dimension_semantics<parallel>], iteration_bounds = array<i64: 1>, scalar_prefetch = 0 : i64, scratch_operands = 0 : i64, tpu.core_type = #tpu.core_type<tc>, window_params = [{transform_indices = @transform_0, window_bounds = array<i64: 2, 8, 128>}, {pipeline_mode = #tpu.pipeline_mode<synchronous>, transform_indices = @transform_1, window_bounds = array<i64: 128, 128>}, {pipeline_mode = #tpu.pipeline_mode<synchronous>, transform_indices = @transform_2, window_bounds = array<i64: 1, 128>}, {pipeline_mode = #tpu.pipeline_mode<synchronous>, transform_indices = @transform_3, window_bounds = array<i64: 128, 128>}, {pipeline_mode = #tpu.pipeline_mode<synchronous>, transform_indices = @transform_4, window_bounds = array<i64: 1, 128>}, {pipeline_mode = #tpu.pipeline_mode<synchronous>, transform_indices = @transform_5, window_bounds = array<i64: 128, 128>}, {pipeline_mode = #tpu.pipeline_mode<synchronous>, transform_indices = @transform_6, window_bounds = array<i64: 1, 128>}, {transform_indices = @transform_7, window_bounds = array<i64: 2, 8, 128>}]} {
    %c0 = arith.constant 0 : index
    %c0_0 = arith.constant 0 : index
    %c0_1 = arith.constant 0 : index
    %0 = vector.load %arg1[%c0, %c0_0, %c0_1] : memref<2x8x128xbf16, #tpu.memory_space<vmem>>, vector<2x8x128xbf16>
    %1 = vector.shape_cast %0 : vector<2x8x128xbf16> to vector<16x128xbf16>
    %c0_2 = arith.constant 0 : index
    %c0_3 = arith.constant 0 : index
    %2 = vector.load %arg2[%c0_2, %c0_3] : memref<128x128xbf16, #tpu.memory_space<vmem>>, vector<128x128xbf16>
    %cst = arith.constant dense<0.000000e+00> : vector<16x128xf32>
    %3 = tpu.matmul %1, %2, %cst {dimension_numbers = #tpu.dot_dimension_numbers<[1], [0], [0], [1], [0, 0, 1, 1], [], []>} : vector<16x128xbf16>, vector<128x128xbf16>, vector<16x128xf32> -> vector<16x128xf32>
    %c0_4 = arith.constant 0 : index
    %c0_5 = arith.constant 0 : index
    %4 = vector.load %arg3[%c0_4, %c0_5] : memref<1x128xf32, #tpu.memory_space<vmem>>, vector<1x128xf32>
    %5 = vector.broadcast %4 : vector<1x128xf32> to vector<16x128xf32>
    %6 = arith.addf %3, %5 : vector<16x128xf32>
    %c0_6 = arith.constant 0 : index
    %c0_7 = arith.constant 0 : index
    %7 = vector.load %arg4[%c0_6, %c0_7] : memref<128x128xbf16, #tpu.memory_space<vmem>>, vector<128x128xbf16>
    %cst_8 = arith.constant dense<0.000000e+00> : vector<16x128xf32>
    %8 = tpu.matmul %1, %7, %cst_8 {dimension_numbers = #tpu.dot_dimension_numbers<[1], [0], [0], [1], [0, 0, 1, 1], [], []>} : vector<16x128xbf16>, vector<128x128xbf16>, vector<16x128xf32> -> vector<16x128xf32>
    %c0_9 = arith.constant 0 : index
    %c0_10 = arith.constant 0 : index
    %9 = vector.load %arg5[%c0_9, %c0_10] : memref<1x128xf32, #tpu.memory_space<vmem>>, vector<1x128xf32>
    %10 = vector.broadcast %9 : vector<1x128xf32> to vector<16x128xf32>
    %11 = arith.addf %8, %10 : vector<16x128xf32>
    %c0_11 = arith.constant 0 : index
    %c0_12 = arith.constant 0 : index
    %12 = vector.load %arg6[%c0_11, %c0_12] : memref<128x128xbf16, #tpu.memory_space<vmem>>, vector<128x128xbf16>
    %cst_13 = arith.constant dense<0.000000e+00> : vector<16x128xf32>
    %13 = tpu.matmul %1, %12, %cst_13 {dimension_numbers = #tpu.dot_dimension_numbers<[1], [0], [0], [1], [0, 0, 1, 1], [], []>} : vector<16x128xbf16>, vector<128x128xbf16>, vector<16x128xf32> -> vector<16x128xf32>
    %c0_14 = arith.constant 0 : index
    %c0_15 = arith.constant 0 : index
    %14 = vector.load %arg7[%c0_14, %c0_15] : memref<1x128xf32, #tpu.memory_space<vmem>>, vector<1x128xf32>
    %15 = vector.broadcast %14 : vector<1x128xf32> to vector<16x128xf32>
    %16 = arith.addf %13, %15 : vector<16x128xf32>
    %17 = vector.shape_cast %6 : vector<16x128xf32> to vector<2x8x128xf32>
    %18 = vector.shape_cast %11 : vector<16x128xf32> to vector<2x8x128xf32>
    %19 = vector.shape_cast %16 : vector<16x128xf32> to vector<2x8x128xf32>
    %cst_16 = arith.constant dense<0.000000e+00> : vector<2x8x8xf32>
    %20 = tpu.matmul %17, %18, %cst_16 {dimension_numbers = #tpu.dot_dimension_numbers<[2], [2], [1], [1], [0, 0, 0, 1, 1, 1], [0], [0]>} : vector<2x8x128xf32>, vector<2x8x128xf32>, vector<2x8x8xf32> -> vector<2x8x8xf32>
    %cst_17 = arith.constant dense<0xFF800000> : vector<2x8xf32>
    %21 = vector.multi_reduction <maximumf>, %20, %cst_17 [2] : vector<2x8x8xf32> to vector<2x8xf32>
    %22 = vector.shape_cast %21 : vector<2x8xf32> to vector<2x8x1xf32>
    %23 = vector.broadcast %22 : vector<2x8x1xf32> to vector<2x8x8xf32>
    %24 = arith.subf %20, %23 : vector<2x8x8xf32>
    %25 = math.exp %24 : vector<2x8x8xf32>
    %cst_18 = arith.constant dense<0.000000e+00> : vector<2x8xf32>
    %26 = vector.multi_reduction <add>, %25, %cst_18 [2] : vector<2x8x8xf32> to vector<2x8xf32>
    %27 = vector.shape_cast %26 : vector<2x8xf32> to vector<2x8x1xf32>
    %28 = tpu.reciprocal %27 {approx = true} : vector<2x8x1xf32> -> vector<2x8x1xf32>
    %cst_19 = arith.constant 0.176776692 : f32
    %29 = vector.broadcast %cst_19 : f32 to vector<2x8x1xf32>
    %30 = arith.mulf %28, %29 : vector<2x8x1xf32>
    %31 = vector.broadcast %30 : vector<2x8x1xf32> to vector<2x8x8xf32>
    %32 = arith.mulf %25, %31 : vector<2x8x8xf32>
    %33 = arith.truncf %32 : vector<2x8x8xf32> to vector<2x8x8xbf16>
    %34 = arith.truncf %19 : vector<2x8x128xf32> to vector<2x8x128xbf16>
    %cst_20 = arith.constant dense<0.000000e+00> : vector<2x8x128xf32>
    %35 = tpu.matmul %33, %34, %cst_20 {dimension_numbers = #tpu.dot_dimension_numbers<[2], [1], [1], [2], [0, 0, 0, 1, 1, 2], [0], [0]>} : vector<2x8x8xbf16>, vector<2x8x128xbf16>, vector<2x8x128xf32> -> vector<2x8x128xf32>
    %c0_21 = arith.constant 0 : index
    %c0_22 = arith.constant 0 : index
    %c0_23 = arith.constant 0 : index
    %36 = vector.load %arg8[%c0_21, %c0_22, %c0_23] : memref<2x8x128xf32, #tpu.memory_space<vmem>>, vector<2x8x128xf32>
    tpu.vector_store %arg8[%c0_21, %c0_22, %c0_23], %35 {strides = array<i32>} : memref<2x8x128xf32, #tpu.memory_space<vmem>>, vector<2x8x128xf32>,
    return
  }
  func.func @transform_0(%arg0: i32) -> (i32, i32, i32) {
    %c0_i32 = arith.constant 0 : i32
    %c0_i32_0 = arith.constant 0 : i32
    %c0_i32_1 = arith.constant 0 : i32
    return %arg0, %c0_i32, %c0_i32_0 : i32, i32, i32
  }
  func.func @transform_1(%arg0: i32) -> (i32, i32) {
    %c0_i32 = arith.constant 0 : i32
    %c0_i32_0 = arith.constant 0 : i32
    %c0_i32_1 = arith.constant 0 : i32
    return %c0_i32, %c0_i32_0 : i32, i32
  }
  func.func @transform_2(%arg0: i32) -> (i32, i32) {
    %c0_i32 = arith.constant 0 : i32
    %c0_i32_0 = arith.constant 0 : i32
    %c0_i32_1 = arith.constant 0 : i32
    return %c0_i32, %c0_i32_0 : i32, i32
  }
  func.func @transform_3(%arg0: i32) -> (i32, i32) {
    %c0_i32 = arith.constant 0 : i32
    %c0_i32_0 = arith.constant 0 : i32
    %c0_i32_1 = arith.constant 0 : i32
    return %c0_i32, %c0_i32_0 : i32, i32
  }
  func.func @transform_4(%arg0: i32) -> (i32, i32) {
    %c0_i32 = arith.constant 0 : i32
    %c0_i32_0 = arith.constant 0 : i32
    %c0_i32_1 = arith.constant 0 : i32
    return %c0_i32, %c0_i32_0 : i32, i32
  }
  func.func @transform_5(%arg0: i32) -> (i32, i32) {
    %c0_i32 = arith.constant 0 : i32
    %c0_i32_0 = arith.constant 0 : i32
    %c0_i32_1 = arith.constant 0 : i32
    return %c0_i32, %c0_i32_0 : i32, i32
  }
  func.func @transform_6(%arg0: i32) -> (i32, i32) {
    %c0_i32 = arith.constant 0 : i32
    %c0_i32_0 = arith.constant 0 : i32
    %c0_i32_1 = arith.constant 0 : i32
    return %c0_i32, %c0_i32_0 : i32, i32
  }
  func.func @transform_7(%arg0: i32) -> (i32, i32, i32) {
    %c0_i32 = arith.constant 0 : i32
    %c0_i32_0 = arith.constant 0 : i32
    %c0_i32_1 = arith.constant 0 : i32
    return %arg0, %c0_i32, %c0_i32_0 : i32, i32, i32
  }
}

</mosaic_0001>

<bundles_post_ra>
// kernel: tpu_custom_call.1
= control target key start
LH: loop header
LB: loop body
LE: loop exit
PB: predicated region body
PF: predicated region fallthrough
CT: control target
= control target key end

     0   :  { %12 = vsyncpa [#allocation3], 0  ;;  %s1144_s0 = inlined_call_operand.hbm [shape: bf16[2,8,128], index: 0, kind: input, shape index: {}]   ;;  %s1145_s1 = inlined_call_operand.hbm [shape: bf16[128,128], index: 1, kind: input, shape index: {}]   ;;  %s1146_s2 = inlined_call_operand.vmem [shape: f32[1,128], index: 2, kind: input, shape index: {}]   ;;  %s1147_s3 = inlined_call_operand.hbm [shape: bf16[128,128], index: 3, kind: input, shape index: {}]   ;;  %s1148_s4 = inlined_call_operand.vmem [shape: f32[1,128], index: 4, kind: input, shape index: {}]   ;;  %s1149_s5 = inlined_call_operand.hbm [shape: bf16[128,128], index: 5, kind: input, shape index: {}]   ;;  %s1150_s6 = inlined_call_operand.vmem [shape: f32[1,128], index: 6, kind: input, shape index: {}]   ;;  %s1151_s7 = inlined_call_operand.hbm [shape: f32[2,8,128], index: 7, kind: output, shape index: {}]  }
   0x1   :  { %13 = vsyncpa [#allocation6], 0 }
   0x2   :  { %14 = vsyncpa [#allocation9], 0 }
   0x3   :  { %15 = vsyncpa [#allocation4], 0  ;;  %s1009_s24 = smov [#allocation5]   ;;  %s1010_s26 = smov [#allocation2]  }
   0x4   :  { %s33_s25 = sshll.u32 %s1009_s24, 4  ;;  %s21_s27 = sshll.u32 %s1010_s26, 4  ;;  %s34_s25 = int_to_ptr.vmem [resolvable:$true] %s33_s25  ;;  %s22_s27 = int_to_ptr.vmem [resolvable:$true] %s21_s27 }
   0x5   :  { %s909_s28 = scalar_lea.vmem %s34_s25, 1024  ;;  %p914_p1 = scmp.lt.s32.totalorder %s34_s25, %s34_s25 }
   0x6   :  { %p910_p0 = scmp.ne.s32.totalorder %s34_s25, %s909_s28  ;;  %p915_p2 = scmp.lt.s32.totalorder %s909_s28, %s909_s28 }
   0x8   :  { %p916_p3 = por %p915_p2, %p914_p1 }
   0xa   :  { %p917_p4 = pnand %p916_p3, %p910_p0 }
   0xc   :  { %920 = shalt.err (!%p917_p4)
}
   0xd   :  { %s1011_s29 = smov 64   ;;  %s1012_s30 = smov 4  }
   0xe   :  { %39 = dma.hbm_to_vmem [thread:$0]  %s1145_s1, 1024, %s34_s25, [#allocation6], %s1011_s29, %s1011_s29, %s1012_s30  }
   0xf   :  { %s929_s10 = scalar_lea.vmem %s22_s27, 128  ;;  %p934_p6 = scmp.lt.s32.totalorder %s22_s27, %s22_s27 }
  0x10   :  { %p930_p5 = scmp.ne.s32.totalorder %s22_s27, %s929_s10  ;;  %p935_p7 = scmp.lt.s32.totalorder %s929_s10, %s929_s10 }
  0x12   :  { %p936_p8 = por %p935_p7, %p934_p6 }
  0x14   :  { %p937_p9 = pnand %p936_p8, %p930_p5 }
  0x16   :  { %940 = shalt.err (!%p937_p9)
}
  0x17   :  { %27 = dma.hbm_to_vmem [thread:$0]  %s1144_s0, 128, %s22_s27, [#allocation3], %s1011_s29, %s1011_s29, %s1012_s30  }
  0x18   :  { %s1013_s13 = smov [#allocation7]   ;;  %s1014_s15 = smov [#allocation8]  }
  0x19   :  { %s47_s14 = sshll.u32 %s1013_s13, 4  ;;  %s61_s16 = sshll.u32 %s1014_s15, 4  ;;  %s48_s14 = int_to_ptr.vmem [resolvable:$true] %s47_s14  ;;  %s62_s16 = int_to_ptr.vmem [resolvable:$true] %s61_s16 }
  0x1a   :  { %s949_s1 = scalar_lea.vmem %s48_s14, 1024  ;;  %p954_p11 = scmp.lt.s32.totalorder %s48_s14, %s48_s14 }
  0x1b   :  { %p950_p10 = scmp.ne.s32.totalorder %s48_s14, %s949_s1  ;;  %p955_p12 = scmp.lt.s32.totalorder %s949_s1, %s949_s1 }
  0x1d   :  { %p956_p13 = por %p955_p12, %p954_p11 }
  0x1f   :  { %p957_p0 = pnand %p956_p13, %p950_p10 }
  0x21   :  { %960 = shalt.err (!%p957_p0)
}
  0x22   :  { %53 = dma.hbm_to_vmem [thread:$0]  %s1147_s3, 1024, %s48_s14, [#allocation6], %s1011_s29, %s1011_s29, %s1012_s30  }
  0x23   :  { %s969_s0 = scalar_lea.vmem %s62_s16, 1024  ;;  %p974_p2 = scmp.lt.s32.totalorder %s62_s16, %s62_s16 }
  0x24   :  { %p970_p1 = scmp.ne.s32.totalorder %s62_s16, %s969_s0  ;;  %p975_p3 = scmp.lt.s32.totalorder %s969_s0, %s969_s0 }
  0x26   :  { %p976_p4 = por %p975_p3, %p974_p2 }
  0x28   :  { %p977_p5 = pnand %p976_p4, %p970_p1 }
  0x2a   :  { %980 = shalt.err (!%p977_p5)
}
  0x2b   :  { %67 = dma.hbm_to_vmem [thread:$0]  %s1149_s5, 1024, %s62_s16, [#allocation9], %s1011_s29, %s1011_s29, %s1012_s30  }
  0x2c   :  { %1001 = dma.done.wait [#allocation3], 128  }
  0x2d   :  { %1002 = vsyncadd [#allocation3], 4294967168 }
  0x2e   :  { %1003 = dma.done.wait [#allocation6], 2048  }
  0x2f   :  { %1004 = vsyncadd [#allocation6], 4294965248 }
  0x30   :  { %1005 = dma.done.wait [#allocation9], 1024  }
  0x31   :  { %1006 = vsyncadd [#allocation9], 4294966272  ;;  %v1015_v0 = vmov 0.0   ;;  %vm1016_vm0 = vmmov 0   ;;  %v868_v1 = vld [vmem:[#allocation7 + $0x38] sm:$0xff]   ;;  %v870_v3 = vld [vmem:[#allocation7 + $0x30] sm:$0xff]  }
  0x32   :  { %795 = vmatprep.subr.bf16.mxu1 %v1015_v0  ;;  %775 = vmatprep.subr.bf16.mxu0 %v1015_v0  ;;  %v869_v2 = vld [vmem:[#allocation5 + $0x38] sm:$0xff]   ;;  %v871_v4 = vld [vmem:[#allocation5 + $0x30] sm:$0xff]   ;;  %v872_v5 = vld [vmem:[#allocation7 + $0x28] sm:$0xff]   ;;  %vm567_vm1 = vcmask 64512   ;;  %vm599_vm2 = vcmask 1043456  }
  0x33   :  { %811 = vmatprep.mubr.msk.bf16.mxu1 %vm1016_vm0, %v1015_v0  ;;  %791 = vmatprep.mubr.msk.bf16.mxu0 %vm1016_vm0, %v1015_v0  ;;  %v873_v6 = vld [vmem:[#allocation5 + $0x28] sm:$0xff]   ;;  %v874_v7 = vld [vmem:[#allocation7 + $0x20] sm:$0xff]   ;;  %v876_v9 = vld [vmem:[#allocation7 + $0x18] sm:$0xff]  }
  0x34   :  { %796 = vmatpush3.bf16.msra.mxu1 %v868_v1  ;;  %776 = vmatpush3.bf16.msra.mxu0 %v869_v2  ;;  %v875_v8 = vld [vmem:[#allocation5 + $0x20] sm:$0xff]   ;;  %v877_v10 = vld [vmem:[#allocation5 + $0x18] sm:$0xff]   ;;  %v878_v11 = vld [vmem:[#allocation7 + $0x10] sm:$0xff]  }
  0x35   :  { %797 = vmatprep.subr.bf16.mxu1 %v1015_v0  ;;  %777 = vmatprep.subr.bf16.mxu0 %v1015_v0  ;;  %v879_v12 = vld [vmem:[#allocation5 + $0x10] sm:$0xff]   ;;  %v880_v13 = vld [vmem:[#allocation7 + $0x8] sm:$0xff]   ;;  %v882_v15 = vld [vmem:[#allocation7] sm:$0xff]  }
  0x36   :  { %v881_v14 = vld [vmem:[#allocation5 + $0x8] sm:$0xff]   ;;  %v883_v16 = vld [vmem:[#allocation5] sm:$0xff]   ;;  %v884_v17 = vld [vmem:[#allocation2] sm:$0xff]  }
  0x37   :  { %v720_v18 = vld [vmem:[%s1148_s4] ss:$0 sm:$0xff]  ;;  %v886_v33 = vld [vmem:[#allocation8 + $0x30] sm:$0xff]   ;;  %v887_v34 = vld [vmem:[#allocation8 + $0x28] sm:$0xff]  }
  0x38   :  { %798 = vmatpush3.bf16.msra.mxu1 %v870_v3  ;;  %778 = vmatpush3.bf16.msra.mxu0 %v871_v4  ;;  %v710_v19 = vld [vmem:[%s1146_s2] ss:$0 sm:$0xff]  ;;  %v888_v35 = vld [vmem:[#allocation8 + $0x20] sm:$0xff]   ;;  %v890_v37 = vld [vmem:[#allocation8 + $0x10] sm:$0xff]  }
  0x39   :  { %799 = vmatprep.subr.bf16.mxu1 %v1015_v0  ;;  %779 = vmatprep.subr.bf16.mxu0 %v1015_v0  ;;  %v885_v32 = vld [vmem:[#allocation8 + $0x38] sm:$0xff]   ;;  %v891_v38 = vld [vmem:[#allocation8 + $0x8] sm:$0xff]   ;;  %v892_v39 = vld [vmem:[#allocation8] sm:$0xff]  }
  0x3a   :  { %v889_v36 = vld [vmem:[#allocation8 + $0x18] sm:$0xff]  }
  0x3b   :  { %v729_v59 = vld [vmem:[%s1150_s6] ss:$0 sm:$0xff]  ;;  %s1017_s6 = smov [#allocation10]  }
  0x3c   :  { %800 = vmatpush3.bf16.msra.mxu1 %v872_v5  ;;  %780 = vmatpush3.bf16.msra.mxu0 %v873_v6  ;;  %s696_s23 = sshll.u32 %s1017_s6, 4  ;;  %s697_s23 = int_to_ptr.vmem [resolvable:$true] %s696_s23 }
  0x3d   :  { %801 = vmatprep.subr.bf16.mxu1 %v1015_v0  ;;  %781 = vmatprep.subr.bf16.mxu0 %v1015_v0  ;;  %s981_s24 = scalar_lea.vmem %s697_s23, 256  ;;  %p986_p7 = scmp.lt.s32.totalorder %s697_s23, %s697_s23 }
  0x3e   :  { %p982_p6 = scmp.ne.s32.totalorder %s697_s23, %s981_s24  ;;  %p987_p8 = scmp.lt.s32.totalorder %s981_s24, %s981_s24 }
  0x40   :  { %802 = vmatpush3.bf16.msra.mxu1 %v874_v7  ;;  %782 = vmatpush3.bf16.msra.mxu0 %v875_v8  ;;  %p988_p9 = por %p987_p8, %p986_p7 }
  0x41   :  { %803 = vmatprep.subr.bf16.mxu1 %v1015_v0  ;;  %783 = vmatprep.subr.bf16.mxu0 %v1015_v0 }
  0x42   :  { %p989_p10 = pnand %p988_p9, %p982_p6 }
  0x44   :  { %804 = vmatpush3.bf16.msra.mxu1 %v876_v9  ;;  %784 = vmatpush3.bf16.msra.mxu0 %v877_v10 }
  0x45   :  { %805 = vmatprep.subr.bf16.mxu1 %v1015_v0  ;;  %785 = vmatprep.subr.bf16.mxu0 %v1015_v0 }
  0x48   :  { %806 = vmatpush3.bf16.msra.mxu1 %v878_v11  ;;  %786 = vmatpush3.bf16.msra.mxu0 %v879_v12 }
  0x49   :  { %807 = vmatprep.subr.bf16.mxu1 %v1015_v0  ;;  %787 = vmatprep.subr.bf16.mxu0 %v1015_v0 }
  0x4c   :  { %808 = vmatpush3.bf16.msra.mxu1 %v880_v13  ;;  %788 = vmatpush3.bf16.msra.mxu0 %v881_v14 }
  0x4d   :  { %809 = vmatprep.subr.bf16.mxu1 %v1015_v0  ;;  %789 = vmatprep.subr.bf16.mxu0 %v1015_v0 }
  0x50   :  { %810 = vmatpush3.bf16.msra.mxu1 %v882_v15  ;;  %790 = vmatpush3.bf16.msra.mxu0 %v883_v16 }
  0x51   :  { %835 = vmatprep.subr.mxu1 %v1015_v0  ;;  %815 = vmatprep.subr.bf16.mxu0 %v1015_v0 }
  0x53   :  { %812 = vmatmul.mubr.bf16.vlgmr.msra.gmra.mxu1 %v884_v17  ;;  %792 = vmatmul.mubr.bf16.vlgmr.msra.gmra.mxu0 %v884_v17 }
  0x54   :  { %837 = vmatprep.mubr.msk.f32.mxu1 %vm1016_vm0, %v1015_v0  ;;  %831 = vmatprep.mubr.msk.bf16.mxu0 %vm1016_vm0, %v1015_v0 }
  0x55   :  { %816 = vmatpush3.bf16.msra.mxu0 %v885_v32 }
  0x56   :  { %817 = vmatprep.subr.bf16.mxu0 %v1015_v0 }
  0x59   :  { %818 = vmatpush3.bf16.msra.mxu0 %v886_v33 }
  0x5a   :  { %819 = vmatprep.subr.bf16.mxu0 %v1015_v0 }
  0x5d   :  { %820 = vmatpush3.bf16.msra.mxu0 %v887_v34 }
  0x5e   :  { %821 = vmatprep.subr.bf16.mxu0 %v1015_v0 }
  0x61   :  { %822 = vmatpush3.bf16.msra.mxu0 %v888_v35 }
  0x62   :  { %823 = vmatprep.subr.bf16.mxu0 %v1015_v0 }
  0x65   :  { %824 = vmatpush3.bf16.msra.mxu0 %v889_v36 }
  0x66   :  { %825 = vmatprep.subr.bf16.mxu0 %v1015_v0 }
  0x69   :  { %826 = vmatpush3.bf16.msra.mxu0 %v890_v37 }
  0x6a   :  { %827 = vmatprep.subr.bf16.mxu0 %v1015_v0 }
  0x6d   :  { %828 = vmatpush3.bf16.msra.mxu0 %v891_v38 }
  0x6e   :  { %829 = vmatprep.subr.bf16.mxu0 %v1015_v0 }
  0x71   :  { %830 = vmatpush3.bf16.msra.mxu0 %v892_v39 }
  0x74   :  { %832 = vmatmul.mubr.bf16.vlgmr.msra.gmra.mxu0 %v884_v17 }
 0x113   :  { %v308_v20 = vpop.f32.mrf.mxu1  ;;  %v196_v22 = vpop.f32.mrf.mxu0 }
 0x114   :  { %v309_v21 = vadd.f32 %v720_v18, %v308_v20  ;;  %v197_v23 = vadd.f32 %v710_v19, %v196_v22 }
 0x115   :  { %v813_v24 = vpop.f32.mrf.mxu1  ;;  %v793_v25 = vpop.f32.mrf.mxu0 }
 0x116   :  { %836 = vmatpush3.xpose.msra.mxu1 %v309_v21 }
 0x117   :  { %v311_v26 = vpop.f32.mrf.mxu1  ;;  %840 = vmatprep.subr.mxu1 %v1015_v0  ;;  %v199_v28 = vpop.f32.mrf.mxu0 }
 0x118   :  { %v312_v27 = vadd.f32 %v720_v18, %v311_v26  ;;  %v200_v31 = vadd.f32 %v710_v19, %v199_v28 }
 0x119   :  { %v814_v29 = vpop.f32.mrf.mxu1  ;;  %838 = vmatmul.mubr.f32.vlgmr.msra.gmra.mxu1 %v197_v23  ;;  %v794_v30 = vpop.f32.mrf.mxu0 }
 0x11a   :  { %841 = vmatpush3.xpose.msra.mxu1 %v312_v27  ;;  %842 = vmatprep.mubr.msk.f32.mxu1 %vm1016_vm0, %v1015_v0 }
 0x11b   :  { %845 = vmatprep.subr.bf16.mxu1 %v1015_v0 }
 0x11d   :  { %843 = vmatmul.mubr.f32.vlgmr.msra.gmra.mxu1 %v200_v31 }
 0x11e   :  { %847 = vmatprep.mubr.msk.bf16.mxu1 %vm1016_vm0, %v1015_v0 }
 0x134   :  { %v420_v56 = vpop.f32.mrf.mxu0 }
 0x135   :  { %v421_v60 = vadd.f32 %v729_v59, %v420_v56 }
 0x136   :  { %v833_v57 = vpop.f32.mrf.mxu0 }
 0x137   :  { %v594_v63 = vpack.c.bf16 %v421_v60, %v421_v60 }
 0x138   :  { %v423_v58 = vpop.f32.mrf.mxu0 }
 0x139   :  { %v424_v62 = vadd.f32 %v729_v59, %v423_v58  ;;  %v601_v2 = vsel %vm599_vm2, %v594_v63, 0 }
 0x13a   :  { %v834_v61 = vpop.f32.mrf.mxu0  ;;  %846 = vmatpush3.bf16.msra.mxu1 %v601_v2 }
 0x13b   :  { %v595_v1 = vpack.c.bf16 %v424_v62, %v424_v62  ;;  %851 = vmatprep.subr.bf16.mxu1 %v1015_v0 }
 0x13d   :  { %v647_v3 = vsel %vm599_vm2, %v595_v1, 0 }
 0x1d9   :  { %v493_v40 = vpop.f32.mrf.mxu1 }
 0x1da   :  { %v568_v41 = vsel %vm567_vm1, %v493_v40, -inf }
 0x1db   :  { %569 = vmax.xlane.f32.xlu0 %v568_v41  ;;  %v839_v42 = vpop.f32.mrf.mxu1 }
 0x1dd   :  { %v563_v43 = vpop.f32.mrf.mxu1 }
 0x1de   :  { %v571_v44 = vsel %vm567_vm1, %v563_v43, -inf }
 0x1df   :  { %572 = vmax.xlane.f32.xlu0 %v571_v44  ;;  %v844_v45 = vpop.f32.mrf.mxu1 }
 0x264   :  { %v570_v46 = vpop.xlane.xlu0 %569 }
 0x265   :  { %v574_v47 = vsub.f32 %v493_v40, %v570_v46 }
 0x267   :  { %v576_v48 = vmul.f32 1.442695, %v574_v47 }
 0x268   :  { %v573_v49 = vpop.xlane.xlu0 %572 }
 0x269   :  { %893 = vpow2.f32 %v576_v48  ;;  %v575_v50 = vsub.f32 %v563_v43, %v573_v49 }
 0x26b   :  { %v578_v51 = vmul.f32 1.442695, %v575_v50 }
 0x26d   :  { %895 = vpow2.f32 %v578_v51 }
 0x276   :  { %v894_v52 = vpop.eup %893 }
 0x277   :  { %v580_v53 = vsel %vm567_vm1, %v894_v52, 0.0 }
 0x278   :  { %581 = vadd.xlane.f32.xlu1 %v580_v53 }
 0x27a   :  { %v896_v54 = vpop.eup %895 }
 0x27b   :  { %v583_v55 = vsel %vm567_vm1, %v896_v54, 0.0 }
 0x27c   :  { %584 = vadd.xlane.f32.xlu1 %v583_v55 }
 0x301   :  { %v582_v4 = vpop.xlane.xlu1 %581 }
 0x302   :  { %897 = vrcp.f32 %v582_v4 }
 0x305   :  { %v585_v5 = vpop.xlane.xlu1 %584 }
 0x306   :  { %899 = vrcp.f32 %v585_v5 }
 0x30f   :  { %v898_v6 = vpop.eup %897 }
 0x310   :  { %v588_v7 = vmul.f32 0.17677669, %v898_v6 }
 0x312   :  { %v590_v8 = vmul.f32 %v894_v52, %v588_v7 }
 0x313   :  { %v900_v9 = vpop.eup %899 }
 0x314   :  { %v592_v10 = vpack.c.bf16 %v590_v8, %v590_v8  ;;  %v589_v11 = vmul.f32 0.17677669, %v900_v9 }
 0x316   :  { %848 = vmatmul.mubr.msk.bf16.vlgmr.msra.gmra.mxu1 %vm567_vm1, %v592_v10  ;;  %v591_v12 = vmul.f32 %v896_v54, %v589_v11 }
 0x317   :  { %852 = vmatpush3.bf16.msra.mxu1 %v647_v3  ;;  %853 = vmatprep.mubr.msk.bf16.mxu1 %vm1016_vm0, %v1015_v0 }
 0x318   :  { %v593_v13 = vpack.c.bf16 %v591_v12, %v591_v12 }
 0x31e   :  { %854 = vmatmul.mubr.msk.bf16.vlgmr.msra.gmra.mxu1 %vm567_vm1, %v593_v13 }
 0x3d6   :  { %v637_v14 = vpop.f32.mrf.mxu1 }
 0x3d7   :  { %689 = vst [vmem:[#allocation10] sm:$0xff] %v637_v14 }
 0x3d8   :  { %v849_v15 = vpop.f32.mrf.mxu1 }
 0x3da   :  { %v640_v16 = vpop.f32.mrf.mxu1 }
 0x3dc   :  { %v850_v17 = vpop.f32.mrf.mxu1 }
 0x3de   :  { %v683_v18 = vpop.f32.mrf.mxu1 }
 0x3df   :  { %690 = vst [vmem:[#allocation10 + $0x8] sm:$0xff] %v683_v18 }
 0x3e0   :  { %v855_v19 = vpop.f32.mrf.mxu1 }
 0x3e1   :  { %992 = shalt.err (!%p989_p10)
}
 0x3e2   :  { %s1018_s25 = smov 128   ;;  %s1019_s26 = smov 8   ;;  %v686_v0 = vpop.f32.mrf.mxu1 }
 0x3e3   :  { %702 = dma.vmem_to_hbm [thread:$0]  %s697_s23, 256, %s1151_s7, [#allocation4], %s1018_s25, %s1018_s25, %s1019_s26  }
 0x3e4   :  { %v856_v20 = vpop.f32.mrf.mxu1 }
 0x3e5   :  { %1007 = dma.done.wait [#allocation4], 256  }
 0x3e6   :  { %1008 = vsyncadd [#allocation4], 4294967040 }
 0x3e7   :  { %706 = vsyncpa [#allocation3], 1 }
 0x3e8   :  { %707 = vsyncpa [#allocation6], 1 }
 0x3e9   :  { %708 = vsyncpa [#allocation9], 1 }
 0x3ea   :  { %709 = vsyncpa [#allocation4], 1 }

</bundles_post_ra>
